<compile_context>
chip_gen: v7x
topology: tpu7x:2x2x1
jax: 0.10.0
libtpu: 0.0.40
codegen_flags: <defaults>
</compile_context>

<pallas_src>
import numpy as np
import jax
import jax.numpy as jnp
from jax.experimental import pallas as pl
from jax.experimental.pallas import tpu as pltpu

_EPS = 1e-5
_LANE = 128
_SUBLANE = 8


def _round_up(n, m):
    return ((n + m - 1) // m) * m


def _vmem_spec():
    return pl.BlockSpec(memory_space=pltpu.MemorySpace.VMEM)


# --------------------------- Module config / params -------------------------

def build_block_config(input_shape, output_shape, linear_out_chan,
                       out_chans_per_layer, kernel_size_per_layer, stride_per_layer):
    out_chans_per_layer = [c for c in out_chans_per_layer if c]
    num_layers = len(out_chans_per_layer)
    if isinstance(kernel_size_per_layer, int):
        kernel_size_per_layer = [kernel_size_per_layer] * num_layers
    if isinstance(stride_per_layer, int):
        stride_per_layer = [stride_per_layer] * num_layers
    kern_stride = list(zip(kernel_size_per_layer, stride_per_layer))
    time_dim = [output_shape[1]]
    for k, s in reversed(kern_stride):
        time_dim.append((time_dim[-1] - k) // s + 1)
    time_dim = time_dim[::-1]
    out_pads = []
    for i, (k, s) in enumerate(kern_stride):
        cur = (time_dim[i] - 1) * s + k
        op = time_dim[i + 1] - cur
        assert 0 <= op < max(s, 1), (
            f"invalid output_padding {op} for kernel={k}, stride={s}")
        out_pads.append(op)
    layers = list(zip(out_chans_per_layer, kernel_size_per_layer,
                      stride_per_layer, out_pads))
    return dict(layers=layers, time_dim=time_dim,
                flat_in=int(np.prod(input_shape)),
                flat_out=time_dim[0] * linear_out_chan,
                linear_out_chan=linear_out_chan)


def init_params(key, cfg):
    params = {}
    k_lw, k_lb, key = jax.random.split(key, 3)
    params["lin_w"] = 0.1 * jax.random.normal(k_lw, (cfg["flat_in"], cfg["flat_out"]), jnp.float32)
    params["lin_b"] = 0.1 * jax.random.normal(k_lb, (cfg["flat_out"],), jnp.float32)
    layers = []
    c_in = cfg["linear_out_chan"]
    for (c_out, ksz, stride, out_pad) in cfg["layers"]:
        key, kw, kb, kg, kbe = jax.random.split(key, 5)
        layers.append(dict(
            gamma=1.0 + 0.1 * jax.random.normal(kg, (c_in,), jnp.float32),
            beta=0.1 * jax.random.normal(kbe, (c_in,), jnp.float32),
            w=0.1 * jax.random.normal(kw, (ksz, c_in, c_out), jnp.float32),  # (K, C_in, C_out)
            b=0.1 * jax.random.normal(kb, (c_out,), jnp.float32),
            stride=stride, out_pad=out_pad,
        ))
        c_in = c_out
    params["layers"] = layers
    return params


# --------------------------- One-time weight folding -------------------------

def fold_params(params, cfg, batch_size, matmul_dtype=jnp.float32):
    """Fold module weights into the dense, padded constants the fused kernel consumes.

    Call ONCE per weight update (these do NOT constant-fold under jit because params
    are traced arrays) and reuse the result for every forward call.
    """
    B = int(batch_size)
    B_pad = _round_up(max(B, _SUBLANE), _SUBLANE)
    T0 = cfg["time_dim"][0]
    C_lin = cfg["linear_out_chan"]
    flat_in = cfg["flat_in"]
    flat_in_pad = _round_up(flat_in, _LANE)

    D0 = C_lin * T0
    D0_pad = _round_up(D0, _LANE)

    lin_w = jnp.zeros((flat_in_pad, D0_pad), jnp.float32)
    lin_w = lin_w.at[:flat_in, :D0].set(params["lin_w"]).astype(matmul_dtype)

    # Packed (1, total) vector holding every per-column constant (fewer tiny DMAs).
    vec_pieces, vec_slices = [], {}

    def _push(name, piece):
        start = sum(int(p.shape[1]) for p in vec_pieces)
        vec_pieces.append(piece.astype(jnp.float32))
        vec_slices[name] = (start, start + int(piece.shape[1]))

    lin_b = jnp.zeros((1, D0_pad), jnp.float32).at[0, :D0].set(params["lin_b"])
    _push("lin_b", lin_b)

    layer_mats, layer_meta = [], []
    flops = 2 * B_pad * flat_in_pad * D0_pad + 3 * B_pad * D0_pad
    trans = 0

    L_in, C_in = T0, C_lin
    for i, layer in enumerate(params["layers"]):
        w = layer["w"]                       # (K, C_in, C_out)
        K, _, C_out = w.shape
        s, op = layer["stride"], layer["out_pad"]
        L_out = (L_in - 1) * s + K + op
        D_in, D_out = C_in * L_in, C_out * L_out
        D_in_pad, D_out_pad = _round_up(D_in, _LANE), _round_up(D_out, _LANE)

        # Factored BN constants: reduce (D_in_pad, C_in) with 1/(B*L_in) baked in,
        # broadcast (C_in, D_in_pad).  O(D*C), not O(D^2).
        r_np = np.zeros((D_in_pad, C_in), np.float32)
        bc_np = np.zeros((C_in, D_in_pad), np.float32)
        for c in range(C_in):
            r_np[c * L_in:(c + 1) * L_in, c] = 1.0 / float(B * L_in)
            bc_np[c, c * L_in:(c + 1) * L_in] = 1.0

        # ConvTranspose1d (taps + stride scatter + output_padding) folded into one
        # dense padded (D_in_pad, D_out_pad) weight -> one MXU matmul in-kernel.
        m3 = np.zeros((K, L_in, L_out), np.float32)
        for k in range(K):
            for l in range(L_in):
                m3[k, l, l * s + k] = 1.0
        wf = jnp.einsum("klt,kcd->cldt", jnp.asarray(m3), w).reshape(D_in, D_out)
        wf_pad = jnp.zeros((D_in_pad, D_out_pad), jnp.float32)
        wf_pad = wf_pad.at[:D_in, :D_out].set(wf).astype(matmul_dtype)

        gamma_w = jnp.zeros((1, D_in_pad), jnp.float32).at[0, :D_in].set(
            jnp.repeat(layer["gamma"], L_in))
        beta_w = jnp.zeros((1, D_in_pad), jnp.float32).at[0, :D_in].set(
            jnp.repeat(layer["beta"], L_in))
        bias_w = jnp.zeros((1, D_out_pad), jnp.float32).at[0, :D_out].set(
            jnp.repeat(layer["b"], L_out))

        _push(f"gamma{i}", gamma_w)
        _push(f"beta{i}", beta_w)
        _push(f"bias{i}", bias_w)
        layer_mats += [jnp.asarray(r_np), jnp.asarray(bc_np), wf_pad]
        layer_meta.append(dict(gamma=vec_slices[f"gamma{i}"],
                               beta=vec_slices[f"beta{i}"],
                               bias=vec_slices[f"bias{i}"]))

        flops += (4 * B_pad * D_in_pad                 # sum / sum-of-squares
                  + 8 * D_in_pad * C_in                # 4 skinny BN dots
                  + 8 * B_pad * D_in_pad               # BN affine + mask
                  + 2 * B_pad * D_in_pad * D_out_pad   # conv matmul
                  + 3 * B_pad * D_out_pad)             # bias + relu + mask
        trans += D_in_pad                              # rsqrt lanes

        L_in, C_in = L_out, C_out

    vec = jnp.concatenate(vec_pieces, axis=1)
    inputs = (lin_w, vec) + tuple(layer_mats)

    D_last = C_in * L_in
    D_last_pad = _round_up(D_last, _LANE)
    out_bytes = B_pad * D_last_pad * 4
    x_bytes = B_pad * flat_in_pad * 4
    bytes_accessed = int(sum(int(a.size) * a.dtype.itemsize for a in inputs)
                         + out_bytes + x_bytes)
    # Explicit VMEM budget (everything resident; generous headroom, below v5e's 16 MiB
    # default scoped limit and far below v7x's 64 MiB physical).
    vmem_limit = int(min(32 * 2 ** 20, max(8 * 2 ** 20, 6 * bytes_accessed)))

    meta = dict(
        batch=B, B_pad=B_pad,
        flat_in=flat_in, flat_in_pad=flat_in_pad,
        matmul_dtype=matmul_dtype,
        lin_b=vec_slices["lin_b"],
        layers=layer_meta,
        C_last=C_in, L_last=L_in, D_last=D_last, D_last_pad=D_last_pad,
        cost=pl.CostEstimate(flops=int(flops), transcendentals=int(trans),
                             bytes_accessed=bytes_accessed),
        vmem_limit_bytes=vmem_limit,
    )
    return dict(inputs=inputs, meta=meta)


# --------------------------- Fused Pallas kernel -----------------------------

def _make_fused_kernel(meta):
    n_layers = len(meta["layers"])
    md = meta["matmul_dtype"]
    B_real = meta["batch"]

    def kernel(x_ref, lin_w_ref, vec_ref, *rest):
        o_ref = rest[-1]
        lrefs = rest[:-1]

        B_pad = x_ref.shape[0]
        row_ids = jax.lax.broadcasted_iota(jnp.int32, (B_pad, 1), 0)
        row_mask = (row_ids < B_real).astype(jnp.float32)   # keep padded rows == 0

        def vslice(sl):                                       # static ref slice: free
            return vec_ref[:, sl[0]:sl[1]]

        # ---- Flatten -> Linear -> ReLU (wide NCL-flat layout: column = c*T0 + t) ----
        h = jnp.dot(x_ref[...].astype(md), lin_w_ref[...],
                    preferred_element_type=jnp.float32)
        h = jnp.maximum(h + vslice(meta["lin_b"]), 0.0) * row_mask

        for i in range(n_layers):
            r_ref, bc_ref, wf_ref = lrefs[3 * i:3 * i + 3]
            lm = meta["layers"][i]

            # ---- BatchNorm1d (training-mode batch stats), f32 throughout ----
            s1 = jnp.sum(h, axis=0, keepdims=True)           # (1, D_in_pad)
            s2 = jnp.sum(h * h, axis=0, keepdims=True)
            mean_c = jnp.dot(s1, r_ref[...], preferred_element_type=jnp.float32)
            ex2_c = jnp.dot(s2, r_ref[...], preferred_element_type=jnp.float32)
            mean_w = jnp.dot(mean_c, bc_ref[...], preferred_element_type=jnp.float32)
            ex2_w = jnp.dot(ex2_c, bc_ref[...], preferred_element_type=jnp.float32)
            var_w = jnp.maximum(ex2_w - mean_w * mean_w, 0.0)          # clamp
            scale_w = vslice(lm["gamma"]) * jax.lax.rsqrt(var_w + _EPS)
            h = h * scale_w + (vslice(lm["beta"]) - mean_w * scale_w)

            # ---- ConvTranspose1d: one MXU matmul on folded weight + bias add ----
            h = jnp.dot(h.astype(md), wf_ref[...],
                        preferred_element_type=jnp.float32)
            h = h + vslice(lm["bias"])
            if i < n_layers - 1:                              # final ReLU removed
                h = jnp.maximum(h, 0.0)
            h = h * row_mask                                  # re-zero padded batch rows

        o_ref[...] = h.astype(o_ref.dtype)                    # (B_pad, D_last_pad)

    return kernel


# --------------------------- Forward (single Pallas call) --------------------

def make_forward(cfg, folded):
    meta = folded["meta"]
    weights = folded["inputs"]
    kernel = _make_fused_kernel(meta)
    n_inputs = 1 + len(weights)

    call = pl.pallas_call(
        kernel,
        out_shape=jax.ShapeDtypeStruct((meta["B_pad"], meta["D_last_pad"]), jnp.float32),
        in_specs=[_vmem_spec()] * n_inputs,
        out_specs=_vmem_spec(),
        compiler_params=pltpu.CompilerParams(
            vmem_limit_bytes=meta["vmem_limit_bytes"]),
        cost_estimate=meta["cost"],
    )
    # v7x note: gridless single call (one TensorCore). Add a parallel grid + two-phase
    # BN reduction only when B or the output widths grow enough to matter.

    @jax.jit
    def _fwd(x, w):
        B = x.shape[0]
        xf = x.reshape(B, -1).astype(jnp.float32)
        x_pad = jnp.pad(xf, ((0, meta["B_pad"] - B),
                             (0, meta["flat_in_pad"] - xf.shape[1])))
        y = call(x_pad, *w)
        y = y[:B, :meta["D_last"]]
        return y.reshape(B, meta["C_last"], meta["L_last"])   # NCL

    def forward(x):
        assert x.shape[0] == meta["batch"], \
            "folded constants bake in 1/(B*L) for BatchNorm; re-fold for a new batch size"
        return _fwd(x, weights)

    return forward


# --------------------------- Pure NumPy reference ----------------------------

def reference_forward(x, params, cfg):
    x = np.asarray(x, np.float32)
    B = x.shape[0]
    h = x.reshape(B, -1) @ np.asarray(params["lin_w"]) + np.asarray(params["lin_b"])
    h = np.maximum(h, 0.0)
    h = h.reshape(B, cfg["linear_out_chan"], cfg["time_dim"][0])   # NCL
    n_layers = len(params["layers"])
    for i, layer in enumerate(params["layers"]):
        gamma, beta = np.asarray(layer["gamma"]), np.asarray(layer["beta"])
        mean = h.mean(axis=(0, 2), keepdims=True)
        var = h.var(axis=(0, 2), keepdims=True)
        h = (h - mean) / np.sqrt(var + _EPS) * gamma[None, :, None] + beta[None, :, None]
        w, bias = np.asarray(layer["w"]), np.asarray(layer["b"])
        K, C_in, C_out = w.shape
        s, op = layer["stride"], layer["out_pad"]
        L_in = h.shape[2]
        L_out = (L_in - 1) * s + K + op
        y = np.zeros((B, C_out, L_out), np.float32)
        for k in range(K):
            for l in range(L_in):
                y[:, :, l * s + k] += h[:, :, l] @ w[k]
        y += bias[None, :, None]
        if i < n_layers - 1:
            y = np.maximum(y, 0.0)
        h = y
    return h


# --------------------------- Main --------------------------------------------

if __name__ == "__main__":
    B = 2
    input_shape = (4, 8)      # (C, T) of block input
    output_shape = (6, 16)    # (C, T) of block output
    cfg = build_block_config(input_shape, output_shape,
                             linear_out_chan=8,
                             out_chans_per_layer=[16, 6],
                             kernel_size_per_layer=3,
                             stride_per_layer=2)

    key = jax.random.PRNGKey(0)
    kp, kx = jax.random.split(key)
    params = init_params(kp, cfg)
    x = jax.random.normal(kx, (B,) + input_shape, jnp.float32)

    y_ref = reference_forward(x, params, cfg)

    # f32 matmul path: tight numerical check against the reference.
    folded_f32 = fold_params(params, cfg, batch_size=B, matmul_dtype=jnp.float32)
    fwd_f32 = make_forward(cfg, folded_f32)
    y = jax.block_until_ready(fwd_f32(x))
    assert y.shape == (B,) + output_shape, y.shape
    np.testing.assert_allclose(np.asarray(y), y_ref, rtol=2e-3, atol=2e-3)

    # bf16 matmul-operand path (v6e/v7x MXU; BN stays f32): loose sanity check only.
    folded_bf16 = fold_params(params, cfg, batch_size=B, matmul_dtype=jnp.bfloat16)
    fwd_bf16 = make_forward(cfg, folded_bf16)
    y16 = jax.block_until_ready(fwd_bf16(x))
    assert np.all(np.isfinite(np.asarray(y16)))
    np.testing.assert_allclose(np.asarray(y16), y_ref, rtol=0.25, atol=0.25)

    print("KERNEL_OK")
</pallas_src>

<mosaic_0001>
module attributes {stable_mosaic.version = 11 : i64} {
  func.func @kernel(%arg0: memref<8x128xf32, #tpu.memory_space<vmem>>, %arg1: memref<128x128xf32, #tpu.memory_space<vmem>>, %arg2: memref<1x896xf32, #tpu.memory_space<vmem>>, %arg3: memref<128x8xf32, #tpu.memory_space<vmem>>, %arg4: memref<8x128xf32, #tpu.memory_space<vmem>>, %arg5: memref<128x128xf32, #tpu.memory_space<vmem>>, %arg6: memref<128x16xf32, #tpu.memory_space<vmem>>, %arg7: memref<16x128xf32, #tpu.memory_space<vmem>>, %arg8: memref<128x128xf32, #tpu.memory_space<vmem>>, %arg9: memref<8x128xf32, #tpu.memory_space<vmem>>) attributes {dimension_semantics = [], scalar_prefetch = 0 : i64, scratch_operands = 0 : i64, tpu.core_type = #tpu.core_type<tc>} {
    %0 = tpu.iota {dimensions = array<i32: 0>} : vector<8x1xi32>
    %c2_i32 = arith.constant 2 : i32
    %1 = vector.broadcast %c2_i32 : i32 to vector<8x1xi32>
    %2 = arith.cmpi slt, %0, %1 : vector<8x1xi32>
    %3 = arith.extui %2 : vector<8x1xi1> to vector<8x1xi32>
    %4 = arith.sitofp %3 : vector<8x1xi32> to vector<8x1xf32>
    %c0 = arith.constant 0 : index
    %c0_0 = arith.constant 0 : index
    %5 = vector.load %arg0[%c0, %c0_0] : memref<8x128xf32, #tpu.memory_space<vmem>>, vector<8x128xf32>
    %c0_1 = arith.constant 0 : index
    %c0_2 = arith.constant 0 : index
    %6 = vector.load %arg1[%c0_1, %c0_2] : memref<128x128xf32, #tpu.memory_space<vmem>>, vector<128x128xf32>
    %cst = arith.constant dense<0.000000e+00> : vector<8x128xf32>
    %7 = tpu.matmul %5, %6, %cst {dimension_numbers = #tpu.dot_dimension_numbers<[1], [0], [0], [1], [0, 0, 1, 1], [], []>} : vector<8x128xf32>, vector<128x128xf32>, vector<8x128xf32> -> vector<8x128xf32>
    %c0_3 = arith.constant 0 : index
    %c0_4 = arith.constant 0 : index
    %8 = vector.load %arg2[%c0_3, %c0_4] : memref<1x896xf32, #tpu.memory_space<vmem>>, vector<1x128xf32>
    %9 = vector.broadcast %8 : vector<1x128xf32> to vector<8x128xf32>
    %10 = arith.addf %7, %9 : vector<8x128xf32>
    %cst_5 = arith.constant 0.000000e+00 : f32
    %11 = vector.broadcast %cst_5 : f32 to vector<8x128xf32>
    %12 = arith.maximumf %10, %11 : vector<8x128xf32>
    %13 = vector.broadcast %4 : vector<8x1xf32> to vector<8x128xf32>
    %14 = arith.mulf %12, %13 : vector<8x128xf32>
    %cst_6 = arith.constant dense<0.000000e+00> : vector<128xf32>
    %15 = vector.multi_reduction <add>, %14, %cst_6 [0] : vector<8x128xf32> to vector<128xf32>
    %16 = vector.shape_cast %15 : vector<128xf32> to vector<1x128xf32>
    %17 = arith.mulf %14, %14 : vector<8x128xf32>
    %cst_7 = arith.constant dense<0.000000e+00> : vector<128xf32>
    %18 = vector.multi_reduction <add>, %17, %cst_7 [0] : vector<8x128xf32> to vector<128xf32>
    %19 = vector.shape_cast %18 : vector<128xf32> to vector<1x128xf32>
    %c0_8 = arith.constant 0 : index
    %c0_9 = arith.constant 0 : index
    %20 = vector.load %arg3[%c0_8, %c0_9] : memref<128x8xf32, #tpu.memory_space<vmem>>, vector<128x8xf32>
    %cst_10 = arith.constant dense<0.000000e+00> : vector<1x8xf32>
    %21 = tpu.matmul %16, %20, %cst_10 {dimension_numbers = #tpu.dot_dimension_numbers<[1], [0], [0], [1], [0, 0, 1, 1], [], []>} : vector<1x128xf32>, vector<128x8xf32>, vector<1x8xf32> -> vector<1x8xf32>
    %c0_11 = arith.constant 0 : index
    %c0_12 = arith.constant 0 : index
    %22 = vector.load %arg3[%c0_11, %c0_12] : memref<128x8xf32, #tpu.memory_space<vmem>>, vector<128x8xf32>
    %cst_13 = arith.constant dense<0.000000e+00> : vector<1x8xf32>
    %23 = tpu.matmul %19, %22, %cst_13 {dimension_numbers = #tpu.dot_dimension_numbers<[1], [0], [0], [1], [0, 0, 1, 1], [], []>} : vector<1x128xf32>, vector<128x8xf32>, vector<1x8xf32> -> vector<1x8xf32>
    %c0_14 = arith.constant 0 : index
    %c0_15 = arith.constant 0 : index
    %24 = vector.load %arg4[%c0_14, %c0_15] : memref<8x128xf32, #tpu.memory_space<vmem>>, vector<8x128xf32>
    %cst_16 = arith.constant dense<0.000000e+00> : vector<1x128xf32>
    %25 = tpu.matmul %21, %24, %cst_16 {dimension_numbers = #tpu.dot_dimension_numbers<[1], [0], [0], [1], [0, 0, 1, 1], [], []>} : vector<1x8xf32>, vector<8x128xf32>, vector<1x128xf32> -> vector<1x128xf32>
    %c0_17 = arith.constant 0 : index
    %c0_18 = arith.constant 0 : index
    %26 = vector.load %arg4[%c0_17, %c0_18] : memref<8x128xf32, #tpu.memory_space<vmem>>, vector<8x128xf32>
    %cst_19 = arith.constant dense<0.000000e+00> : vector<1x128xf32>
    %27 = tpu.matmul %23, %26, %cst_19 {dimension_numbers = #tpu.dot_dimension_numbers<[1], [0], [0], [1], [0, 0, 1, 1], [], []>} : vector<1x8xf32>, vector<8x128xf32>, vector<1x128xf32> -> vector<1x128xf32>
    %28 = arith.mulf %25, %25 : vector<1x128xf32>
    %29 = arith.subf %27, %28 : vector<1x128xf32>
    %cst_20 = arith.constant 0.000000e+00 : f32
    %30 = vector.broadcast %cst_20 : f32 to vector<1x128xf32>
    %31 = arith.maximumf %29, %30 : vector<1x128xf32>
    %c0_21 = arith.constant 0 : index
    %c128 = arith.constant 128 : index
    %32 = vector.load %arg2[%c0_21, %c128] : memref<1x896xf32, #tpu.memory_space<vmem>>, vector<1x128xf32>
    %cst_22 = arith.constant 9.99999974E-6 : f32
    %33 = vector.broadcast %cst_22 : f32 to vector<1x128xf32>
    %34 = arith.addf %31, %33 : vector<1x128xf32>
    %35 = math.rsqrt %34 : vector<1x128xf32>
    %36 = arith.mulf %32, %35 : vector<1x128xf32>
    %37 = vector.broadcast %36 : vector<1x128xf32> to vector<8x128xf32>
    %38 = arith.mulf %14, %37 : vector<8x128xf32>
    %c0_23 = arith.constant 0 : index
    %c256 = arith.constant 256 : index
    %39 = vector.load %arg2[%c0_23, %c256] : memref<1x896xf32, #tpu.memory_space<vmem>>, vector<1x128xf32>
    %40 = arith.mulf %25, %36 : vector<1x128xf32>
    %41 = arith.subf %39, %40 : vector<1x128xf32>
    %42 = vector.broadcast %41 : vector<1x128xf32> to vector<8x128xf32>
    %43 = arith.addf %38, %42 : vector<8x128xf32>
    %c0_24 = arith.constant 0 : index
    %c0_25 = arith.constant 0 : index
    %44 = vector.load %arg5[%c0_24, %c0_25] : memref<128x128xf32, #tpu.memory_space<vmem>>, vector<128x128xf32>
    %cst_26 = arith.constant dense<0.000000e+00> : vector<8x128xf32>
    %45 = tpu.matmul %43, %44, %cst_26 {dimension_numbers = #tpu.dot_dimension_numbers<[1], [0], [0], [1], [0, 0, 1, 1], [], []>} : vector<8x128xf32>, vector<128x128xf32>, vector<8x128xf32> -> vector<8x128xf32>
    %c0_27 = arith.constant 0 : index
    %c384 = arith.constant 384 : index
    %46 = vector.load %arg2[%c0_27, %c384] : memref<1x896xf32, #tpu.memory_space<vmem>>, vector<1x128xf32>
    %47 = vector.broadcast %46 : vector<1x128xf32> to vector<8x128xf32>
    %48 = arith.addf %45, %47 : vector<8x128xf32>
    %cst_28 = arith.constant 0.000000e+00 : f32
    %49 = vector.broadcast %cst_28 : f32 to vector<8x128xf32>
    %50 = arith.maximumf %48, %49 : vector<8x128xf32>
    %51 = vector.broadcast %4 : vector<8x1xf32> to vector<8x128xf32>
    %52 = arith.mulf %50, %51 : vector<8x128xf32>
    %cst_29 = arith.constant dense<0.000000e+00> : vector<128xf32>
    %53 = vector.multi_reduction <add>, %52, %cst_29 [0] : vector<8x128xf32> to vector<128xf32>
    %54 = vector.shape_cast %53 : vector<128xf32> to vector<1x128xf32>
    %55 = arith.mulf %52, %52 : vector<8x128xf32>
    %cst_30 = arith.constant dense<0.000000e+00> : vector<128xf32>
    %56 = vector.multi_reduction <add>, %55, %cst_30 [0] : vector<8x128xf32> to vector<128xf32>
    %57 = vector.shape_cast %56 : vector<128xf32> to vector<1x128xf32>
    %c0_31 = arith.constant 0 : index
    %c0_32 = arith.constant 0 : index
    %58 = vector.load %arg6[%c0_31, %c0_32] : memref<128x16xf32, #tpu.memory_space<vmem>>, vector<128x16xf32>
    %cst_33 = arith.constant dense<0.000000e+00> : vector<1x16xf32>
    %59 = tpu.matmul %54, %58, %cst_33 {dimension_numbers = #tpu.dot_dimension_numbers<[1], [0], [0], [1], [0, 0, 1, 1], [], []>} : vector<1x128xf32>, vector<128x16xf32>, vector<1x16xf32> -> vector<1x16xf32>
    %c0_34 = arith.constant 0 : index
    %c0_35 = arith.constant 0 : index
    %60 = vector.load %arg6[%c0_34, %c0_35] : memref<128x16xf32, #tpu.memory_space<vmem>>, vector<128x16xf32>
    %cst_36 = arith.constant dense<0.000000e+00> : vector<1x16xf32>
    %61 = tpu.matmul %57, %60, %cst_36 {dimension_numbers = #tpu.dot_dimension_numbers<[1], [0], [0], [1], [0, 0, 1, 1], [], []>} : vector<1x128xf32>, vector<128x16xf32>, vector<1x16xf32> -> vector<1x16xf32>
    %c0_37 = arith.constant 0 : index
    %c0_38 = arith.constant 0 : index
    %62 = vector.load %arg7[%c0_37, %c0_38] : memref<16x128xf32, #tpu.memory_space<vmem>>, vector<16x128xf32>
    %cst_39 = arith.constant dense<0.000000e+00> : vector<1x128xf32>
    %63 = tpu.matmul %59, %62, %cst_39 {dimension_numbers = #tpu.dot_dimension_numbers<[1], [0], [0], [1], [0, 0, 1, 1], [], []>} : vector<1x16xf32>, vector<16x128xf32>, vector<1x128xf32> -> vector<1x128xf32>
    %c0_40 = arith.constant 0 : index
    %c0_41 = arith.constant 0 : index
    %64 = vector.load %arg7[%c0_40, %c0_41] : memref<16x128xf32, #tpu.memory_space<vmem>>, vector<16x128xf32>
    %cst_42 = arith.constant dense<0.000000e+00> : vector<1x128xf32>
    %65 = tpu.matmul %61, %64, %cst_42 {dimension_numbers = #tpu.dot_dimension_numbers<[1], [0], [0], [1], [0, 0, 1, 1], [], []>} : vector<1x16xf32>, vector<16x128xf32>, vector<1x128xf32> -> vector<1x128xf32>
    %66 = arith.mulf %63, %63 : vector<1x128xf32>
    %67 = arith.subf %65, %66 : vector<1x128xf32>
    %cst_43 = arith.constant 0.000000e+00 : f32
    %68 = vector.broadcast %cst_43 : f32 to vector<1x128xf32>
    %69 = arith.maximumf %67, %68 : vector<1x128xf32>
    %c0_44 = arith.constant 0 : index
    %c512 = arith.constant 512 : index
    %70 = vector.load %arg2[%c0_44, %c512] : memref<1x896xf32, #tpu.memory_space<vmem>>, vector<1x128xf32>
    %cst_45 = arith.constant 9.99999974E-6 : f32
    %71 = vector.broadcast %cst_45 : f32 to vector<1x128xf32>
    %72 = arith.addf %69, %71 : vector<1x128xf32>
    %73 = math.rsqrt %72 : vector<1x128xf32>
    %74 = arith.mulf %70, %73 : vector<1x128xf32>
    %75 = vector.broadcast %74 : vector<1x128xf32> to vector<8x128xf32>
    %76 = arith.mulf %52, %75 : vector<8x128xf32>
    %c0_46 = arith.constant 0 : index
    %c640 = arith.constant 640 : index
    %77 = vector.load %arg2[%c0_46, %c640] : memref<1x896xf32, #tpu.memory_space<vmem>>, vector<1x128xf32>
    %78 = arith.mulf %63, %74 : vector<1x128xf32>
    %79 = arith.subf %77, %78 : vector<1x128xf32>
    %80 = vector.broadcast %79 : vector<1x128xf32> to vector<8x128xf32>
    %81 = arith.addf %76, %80 : vector<8x128xf32>
    %c0_47 = arith.constant 0 : index
    %c0_48 = arith.constant 0 : index
    %82 = vector.load %arg8[%c0_47, %c0_48] : memref<128x128xf32, #tpu.memory_space<vmem>>, vector<128x128xf32>
    %cst_49 = arith.constant dense<0.000000e+00> : vector<8x128xf32>
    %83 = tpu.matmul %81, %82, %cst_49 {dimension_numbers = #tpu.dot_dimension_numbers<[1], [0], [0], [1], [0, 0, 1, 1], [], []>} : vector<8x128xf32>, vector<128x128xf32>, vector<8x128xf32> -> vector<8x128xf32>
    %c0_50 = arith.constant 0 : index
    %c768 = arith.constant 768 : index
    %84 = vector.load %arg2[%c0_50, %c768] : memref<1x896xf32, #tpu.memory_space<vmem>>, vector<1x128xf32>
    %85 = vector.broadcast %84 : vector<1x128xf32> to vector<8x128xf32>
    %86 = arith.addf %83, %85 : vector<8x128xf32>
    %87 = vector.broadcast %4 : vector<8x1xf32> to vector<8x128xf32>
    %88 = arith.mulf %86, %87 : vector<8x128xf32>
    %c0_51 = arith.constant 0 : index
    %c0_52 = arith.constant 0 : index
    %89 = vector.load %arg9[%c0_51, %c0_52] : memref<8x128xf32, #tpu.memory_space<vmem>>, vector<8x128xf32>
    tpu.vector_store %arg9[%c0_51, %c0_52], %88 {strides = array<i32>} : memref<8x128xf32, #tpu.memory_space<vmem>>, vector<8x128xf32>,
    return
  }
}

</mosaic_0001>

<bundles_post_ra>
// kernel: _fwd.1
= control target key start
LH: loop header
LB: loop body
LE: loop exit
PB: predicated region body
PF: predicated region fallthrough
CT: control target
= control target key end

     0   :  { %14 = vsyncpa [#allocation3], 0  ;;  %s2084_s0 = inlined_call_operand.vmem [shape: f32[8,128], index: 0, kind: input, shape index: {}]   ;;  %s2085_s1 = inlined_call_operand.vmem [shape: f32[128,128], index: 1, kind: input, shape index: {}]   ;;  %s2086_s2 = inlined_call_operand.hbm [shape: f32[1,896], index: 2, kind: input, shape index: {}]   ;;  %s2087_s3 = inlined_call_operand.vmem [shape: f32[128,8], index: 3, kind: input, shape index: {}]   ;;  %s2088_s4 = inlined_call_operand.vmem [shape: f32[8,128], index: 4, kind: input, shape index: {}]   ;;  %s2089_s5 = inlined_call_operand.vmem [shape: f32[128,128], index: 5, kind: input, shape index: {}]   ;;  %s2090_s6 = inlined_call_operand.vmem [shape: f32[128,16], index: 6, kind: input, shape index: {}]   ;;  %s2091_s7 = inlined_call_operand.vmem [shape: f32[16,128], index: 7, kind: input, shape index: {}]   ;;  %s2092_s8 = inlined_call_operand.hbm [shape: f32[128,128], index: 8, kind: input, shape index: {}]   ;;  %s2093_s9 = inlined_call_operand.vmem [shape: f32[8,128], index: 9, kind: output, shape index: {}]  }
   0x1   :  { %15 = vsyncpa [#allocation5], 0  ;;  %s1677_s30 = smov [#allocation2]   ;;  %s1678_s11 = smov [#allocation4]  }
   0x2   :  { %s26_s10 = sshll.u32 %s1677_s30, 4  ;;  %s45_s12 = sshll.u32 %s1678_s11, 4  ;;  %s27_s10 = int_to_ptr.vmem [resolvable:$true] %s26_s10  ;;  %s1734_s12 = int_to_ptr.vmem [resolvable:$true] %s45_s12 }
   0x3   :  { %s1629_s15 = scalar_lea.hbm %s2086_s2, 112 }
   0x4   :  { %p1630_p0 = scmp.ne.s32.totalorder %s2086_s2, %s1629_s15  ;;  %p1633_p1 = scmp.lt.u32.totalorder %s1629_s15, %s2086_s2 }
   0x6   :  { %p1635_p2 = pnand %p1633_p1, %p1630_p0 }
   0x8   :  { %1638 = shalt.err (!%p1635_p2)
}
   0x9   :  { %s1639_s20 = scalar_lea.vmem %s27_s10, 112  ;;  %s1643_s21 = scalar_lea.vmem %s27_s10, 128 }
   0xa   :  { %p1640_p3 = scmp.ne.s32.totalorder %s27_s10, %s1639_s20  ;;  %p1644_p4 = scmp.lt.s32.totalorder %s27_s10, %s27_s10 }
   0xb   :  { %p1645_p5 = scmp.lt.s32.totalorder %s1643_s21, %s1639_s20 }
   0xd   :  { %p1646_p6 = por %p1645_p5, %p1644_p4 }
   0xf   :  { %p1647_p7 = pnand %p1646_p6, %p1640_p3 }
  0x11   :  { %1650 = shalt.err (!%p1647_p7)
}
  0x12   :  { %29 = dma.hbm_to_vmem [thread:$0]  %s2086_s2, 112, %s27_s10, [#allocation3]  }
  0x13   :  { %s1651_s26 = scalar_lea.hbm %s2092_s8, 2048 }
  0x14   :  { %p1652_p8 = scmp.ne.s32.totalorder %s2092_s8, %s1651_s26  ;;  %p1655_p9 = scmp.lt.u32.totalorder %s1651_s26, %s2092_s8 }
  0x16   :  { %p1657_p10 = pnand %p1655_p9, %p1652_p8 }
  0x18   :  { %1660 = shalt.err (!%p1657_p10)
}
  0x19   :  { %s1661_s11 = scalar_lea.vmem %s1734_s12, 2048  ;;  %p1666_p12 = scmp.lt.s32.totalorder %s1734_s12, %s1734_s12 }
  0x1a   :  { %p1662_p11 = scmp.ne.s32.totalorder %s1734_s12, %s1661_s11  ;;  %p1667_p13 = scmp.lt.s32.totalorder %s1661_s11, %s1661_s11 }
  0x1c   :  { %p1668_p0 = por %p1667_p13, %p1666_p12 }
  0x1e   :  { %p1669_p1 = pnand %p1668_p0, %p1662_p11 }
  0x20   :  { %1672 = shalt.err (!%p1669_p1)
}
  0x21   :  { %s1679_s2 = smov 128   ;;  %s1680_s10 = smov 8  }
  0x22   :  { %51 = dma.hbm_to_vmem [thread:$0]  %s2092_s8, 2048, %s1734_s12, [#allocation5], %s1679_s2, %s1679_s2, %s1680_s10  }
  0x23   :  { %1673 = dma.done.wait [#allocation3], 112  }
  0x24   :  { %1674 = vsyncadd [#allocation3], 4294967184 }
  0x25   :  { %1675 = dma.done.wait [#allocation5], 2048  }
  0x26   :  { %1676 = vsyncadd [#allocation5], 4294965248  ;;  %v1681_v0 = vmov 0.0|0.0   ;;  %vm1682_vm0 = vmmov 0   ;;  %v1683_v1 = vmov 0.0   ;;  %v64_v2 = vld [vmem:[%s2085_s1] sm:$0xff]  ;;  %v58_v51 = vlaneseq }
  0x27   :  { %1444 = vmatprep.subr.bf16.mxu0 %v1681_v0  ;;  %1207 = vmatprep.mubr.msk.f32.mxu0 %vm1682_vm0, %v1683_v1  ;;  %v65_v3 = vld [vmem:[%s2085_s1 + $0x8] sm:$0xff]  ;;  %v66_v4 = vld [vmem:[%s2085_s1 + $0x10] sm:$0xff]  ;;  %v67_v6 = vld [vmem:[%s2085_s1 + $0x18] sm:$0xff]  ;;  %vm329_vm2 = vcmask 64512   ;;  %vm766_vm3 = vcmask 130048  }
  0x28   :  { %1468 = vmatprep.subr.bf16.mxu1 %v1681_v0  ;;  %1242 = vmatprep.mubr.msk.f32.mxu1 %vm1682_vm0, %v1683_v1  ;;  %v1445_v5 = vpack.c.bf16 %v65_v3, %v64_v2  ;;  %v1448_v7 = vpack.c.bf16 %v67_v6, %v66_v4  ;;  %v68_v8 = vld [vmem:[%s2085_s1 + $0x20] sm:$0xff]  ;;  %v69_v9 = vld [vmem:[%s2085_s1 + $0x28] sm:$0xff]  ;;  %v174_v12 = vld [vmem:[%s2087_s3 + $0x10] sm:$0xff]  ;;  %v1896_v52 = vshrl.u32 %v58_v51, 7 }
  0x29   :  { %v172_v10 = vld [vmem:[%s2087_s3] sm:$0xff]  ;;  %v173_v11 = vld [vmem:[%s2087_s3 + $0x8] sm:$0xff]  ;;  %v175_v13 = vld [vmem:[%s2087_s3 + $0x18] sm:$0xff]  ;;  %v1451_v14 = vpack.c.bf16 %v69_v9, %v68_v8 }
  0x2a   :  { %1446 = vmatpush3.bf16.msra.mxu0 %v1445_v5  ;;  %v1469_v15 = vpack.c.bf16 %v173_v11, %v172_v10  ;;  %v70_v16 = vld [vmem:[%s2085_s1 + $0x30] sm:$0xff]  ;;  %v71_v17 = vld [vmem:[%s2085_s1 + $0x38] sm:$0xff]  ;;  %v1472_v18 = vpack.c.bf16 %v175_v13, %v174_v12  ;;  %v176_v19 = vld [vmem:[%s2087_s3 + $0x20] sm:$0xff]  ;;  %vm60_vm1 = vcmp.lt.s32.totalorder %v1896_v52, 2 }
  0x2b   :  { %1447 = vmatprep.subr.bf16.mxu0 %v1681_v0  ;;  %v177_v20 = vld [vmem:[%s2087_s3 + $0x28] sm:$0xff]  ;;  %v1454_v21 = vpack.c.bf16 %v71_v17, %v70_v16  ;;  %v72_v22 = vld [vmem:[%s2085_s1 + $0x40] sm:$0xff]  ;;  %v74_v26 = vld [vmem:[%s2085_s1 + $0x50] sm:$0xff]  ;;  %v1900_v57 = vsel %vm60_vm1, 1.0, %v1683_v1 }
  0x2c   :  { %1470 = vmatpush3.bf16.msra.mxu1 %v1469_v15  ;;  %v73_v23 = vld [vmem:[%s2085_s1 + $0x48] sm:$0xff]  ;;  %v1475_v24 = vpack.c.bf16 %v177_v20, %v176_v19  ;;  %v75_v27 = vld [vmem:[%s2085_s1 + $0x58] sm:$0xff]  ;;  %v76_v29 = vld [vmem:[%s2085_s1 + $0x60] sm:$0xff] }
  0x2d   :  { %1471 = vmatprep.subr.bf16.mxu1 %v1681_v0  ;;  %v1457_v25 = vpack.c.bf16 %v73_v23, %v72_v22  ;;  %v1460_v28 = vpack.c.bf16 %v75_v27, %v74_v26  ;;  %v77_v30 = vld [vmem:[%s2085_s1 + $0x68] sm:$0xff]  ;;  %v78_v32 = vld [vmem:[%s2085_s1 + $0x70] sm:$0xff]  ;;  %v79_v33 = vld [vmem:[%s2085_s1 + $0x78] sm:$0xff] }
  0x2e   :  { %1449 = vmatpush3.bf16.msra.mxu0 %v1448_v7  ;;  %v1463_v31 = vpack.c.bf16 %v77_v30, %v76_v29  ;;  %v1466_v34 = vpack.c.bf16 %v79_v33, %v78_v32  ;;  %v63_v35 = vld [vmem:[%s2084_s0] sm:$0xff]  ;;  %v178_v36 = vld [vmem:[%s2087_s3 + $0x30] sm:$0xff]  ;;  %v179_v37 = vld [vmem:[%s2087_s3 + $0x38] sm:$0xff] }
  0x2f   :  { %1450 = vmatprep.subr.bf16.mxu0 %v1681_v0  ;;  %v1478_v38 = vpack.c.bf16 %v179_v37, %v178_v36  ;;  %v180_v39 = vld [vmem:[%s2087_s3 + $0x40] sm:$0xff]  ;;  %v181_v40 = vld [vmem:[%s2087_s3 + $0x48] sm:$0xff]  ;;  %v182_v42 = vld [vmem:[%s2087_s3 + $0x50] sm:$0xff] }
  0x30   :  { %1473 = vmatpush3.bf16.msra.mxu1 %v1472_v18  ;;  %v1481_v41 = vpack.c.bf16 %v181_v40, %v180_v39  ;;  %v183_v43 = vld [vmem:[%s2087_s3 + $0x58] sm:$0xff]  ;;  %v184_v45 = vld [vmem:[%s2087_s3 + $0x60] sm:$0xff]  ;;  %v185_v46 = vld [vmem:[%s2087_s3 + $0x68] sm:$0xff] }
  0x31   :  { %1474 = vmatprep.subr.bf16.mxu1 %v1681_v0  ;;  %v1484_v44 = vpack.c.bf16 %v183_v43, %v182_v42  ;;  %v186_v47 = vld [vmem:[%s2087_s3 + $0x70] sm:$0xff]  ;;  %v1487_v48 = vpack.c.bf16 %v185_v46, %v184_v45  ;;  %v187_v49 = vld [vmem:[%s2087_s3 + $0x78] sm:$0xff]  ;;  %v1039_v53 = vld [vmem:[#allocation2] ss:$0 sm:$0xff] }
  0x32   :  { %1452 = vmatpush3.bf16.msra.mxu0 %v1451_v14  ;;  %v1490_v50 = vpack.c.bf16 %v187_v49, %v186_v47  ;;  %v328_v10 = vld [vmem:[%s2088_s4] sm:$0xff]  ;;  %v501_v17 = vld [vmem:[%s2089_s5 + $0x8] sm:$0xff]  ;;  %v502_v19 = vld [vmem:[%s2089_s5 + $0x10] sm:$0xff] }
  0x33   :  { %1453 = vmatprep.subr.bf16.mxu0 %v1681_v0  ;;  %v500_v16 = vld [vmem:[%s2089_s5] sm:$0xff]  ;;  %v503_v20 = vld [vmem:[%s2089_s5 + $0x18] sm:$0xff]  ;;  %v505_v23 = vld [vmem:[%s2089_s5 + $0x28] sm:$0xff] }
  0x34   :  { %1476 = vmatpush3.bf16.msra.mxu1 %v1475_v24  ;;  %v504_v22 = vld [vmem:[%s2089_s5 + $0x20] sm:$0xff]  ;;  %v507_v26 = vld [vmem:[%s2089_s5 + $0x38] sm:$0xff]  ;;  %v509_v29 = vld [vmem:[%s2089_s5 + $0x48] sm:$0xff] }
  0x35   :  { %1477 = vmatprep.subr.bf16.mxu1 %v1681_v0  ;;  %v511_v32 = vld [vmem:[%s2089_s5 + $0x58] sm:$0xff]  ;;  %v514_v36 = vld [vmem:[%s2089_s5 + $0x70] sm:$0xff]  ;;  %v608_v40 = vld [vmem:[%s2090_s6] sm:$0xff] }
  0x36   :  { %1455 = vmatpush3.bf16.msra.mxu0 %v1454_v21  ;;  %v1520_v21 = vpack.c.bf16 %v503_v20, %v502_v19  ;;  %v610_v43 = vld [vmem:[%s2090_s6 + $0x10] sm:$0xff]  ;;  %v612_v46 = vld [vmem:[%s2090_s6 + $0x20] sm:$0xff]  ;;  %v613_v47 = vld [vmem:[%s2090_s6 + $0x28] sm:$0xff] }
  0x37   :  { %1456 = vmatprep.subr.bf16.mxu0 %v1681_v0  ;;  %v623_v20 = vld [vmem:[%s2090_s6 + $0x78] sm:$0xff] }
  0x38   :  { %1479 = vmatpush3.bf16.msra.mxu1 %v1478_v38 }
  0x39   :  { %1480 = vmatprep.subr.bf16.mxu1 %v1681_v0 }
  0x3a   :  { %1458 = vmatpush3.bf16.msra.mxu0 %v1457_v25  ;;  %v506_v25 = vld [vmem:[%s2089_s5 + $0x30] sm:$0xff] }
  0x3b   :  { %1459 = vmatprep.subr.bf16.mxu0 %v1681_v0  ;;  %v1526_v27 = vpack.c.bf16 %v507_v26, %v506_v25 }
  0x3c   :  { %1482 = vmatpush3.bf16.msra.mxu1 %v1481_v41 }
  0x3d   :  { %1483 = vmatprep.subr.bf16.mxu1 %v1681_v0 }
  0x3e   :  { %1461 = vmatpush3.bf16.msra.mxu0 %v1460_v28  ;;  %v508_v28 = vld [vmem:[%s2089_s5 + $0x40] sm:$0xff] }
  0x3f   :  { %1462 = vmatprep.subr.bf16.mxu0 %v1681_v0  ;;  %v1529_v30 = vpack.c.bf16 %v509_v29, %v508_v28 }
  0x40   :  { %1485 = vmatpush3.bf16.msra.mxu1 %v1484_v44 }
  0x41   :  { %1486 = vmatprep.subr.bf16.mxu1 %v1681_v0 }
  0x42   :  { %1464 = vmatpush3.bf16.msra.mxu0 %v1463_v31  ;;  %v510_v31 = vld [vmem:[%s2089_s5 + $0x50] sm:$0xff] }
  0x43   :  { %1465 = vmatprep.subr.bf16.mxu0 %v1681_v0  ;;  %v1532_v33 = vpack.c.bf16 %v511_v32, %v510_v31 }
  0x44   :  { %1488 = vmatpush3.bf16.msra.mxu1 %v1487_v48 }
  0x45   :  { %1489 = vmatprep.subr.bf16.mxu1 %v1681_v0 }
  0x46   :  { %1467 = vmatpush3.bf16.msra.mxu0 %v1466_v34  ;;  %v512_v34 = vld [vmem:[%s2089_s5 + $0x60] sm:$0xff] }
  0x47   :  { %1492 = vmatprep.subr.bf16.mxu0 %v1681_v0 }
  0x48   :  { %1491 = vmatpush3.bf16.msra.mxu1 %v1490_v50 }
  0x49   :  { %1208 = vmatmul.mubr.f32.vlgmr.msra.gmra.mrb[0].mxu0 %v63_v35  ;;  %1280 = vmatprep.subr.mxu1 %v1683_v1  ;;  %v513_v35 = vld [vmem:[%s2089_s5 + $0x68] sm:$0xff] }
  0x4a   :  { %1494 = vmatpush3.bf16.msra.mxu0 %v1469_v15  ;;  %1277 = vmatprep.mubr.msk.f32.mxu0 %vm1682_vm0, %v1683_v1  ;;  %v1535_v37 = vpack.c.bf16 %v513_v35, %v512_v34 }
  0x4b   :  { %1495 = vmatprep.subr.bf16.mxu0 %v1681_v0 }
  0x4e   :  { %1497 = vmatpush3.bf16.msra.mxu0 %v1472_v18  ;;  %v1517_v18 = vpack.c.bf16 %v501_v17, %v500_v16  ;;  %v620_v16 = vld [vmem:[%s2090_s6 + $0x60] sm:$0xff]  ;;  %v621_v17 = vld [vmem:[%s2090_s6 + $0x68] sm:$0xff] }
  0x4f   :  { %1498 = vmatprep.subr.bf16.mxu0 %v1681_v0  ;;  %v1559_v19 = vpack.c.bf16 %v621_v17, %v620_v16 }
  0x52   :  { %1500 = vmatpush3.bf16.msra.mxu0 %v1475_v24  ;;  %v1523_v24 = vpack.c.bf16 %v505_v23, %v504_v22  ;;  %v1042_v22 = vld [vmem:[#allocation2 + $0x3] ss:$0 sm:$0xff] }
  0x53   :  { %1501 = vmatprep.subr.bf16.mxu0 %v1681_v0 }
  0x56   :  { %1503 = vmatpush3.bf16.msra.mxu0 %v1478_v38  ;;  %v515_v38 = vld [vmem:[%s2089_s5 + $0x78] sm:$0xff] }
  0x57   :  { %1504 = vmatprep.subr.bf16.mxu0 %v1681_v0  ;;  %v1538_v39 = vpack.c.bf16 %v515_v38, %v514_v36  ;;  %v764_v38 = vld [vmem:[%s2091_s7] sm:$0xff] }
  0x5a   :  { %1506 = vmatpush3.bf16.msra.mxu0 %v1481_v41  ;;  %v609_v41 = vld [vmem:[%s2090_s6 + $0x8] sm:$0xff] }
  0x5b   :  { %1507 = vmatprep.subr.bf16.mxu0 %v1681_v0  ;;  %v1541_v42 = vpack.c.bf16 %v609_v41, %v608_v40 }
  0x5e   :  { %1509 = vmatpush3.bf16.msra.mxu0 %v1484_v44  ;;  %v611_v44 = vld [vmem:[%s2090_s6 + $0x18] sm:$0xff] }
  0x5f   :  { %1510 = vmatprep.subr.bf16.mxu0 %v1681_v0  ;;  %v1544_v45 = vpack.c.bf16 %v611_v44, %v610_v43 }
  0x62   :  { %1512 = vmatpush3.bf16.msra.mxu0 %v1487_v48  ;;  %v1547_v48 = vpack.c.bf16 %v613_v47, %v612_v46 }
  0x63   :  { %1513 = vmatprep.subr.bf16.mxu0 %v1681_v0 }
  0x66   :  { %1515 = vmatpush3.bf16.msra.mxu0 %v1490_v50 }
  0x67   :  { %1540 = vmatprep.subr.bf16.mxu0 %v1681_v0 }
 0x11c   :  { %v153_v54 = vpop.f32.mrb[0].mxu0 }
 0x11d   :  { %v154_v55 = vadd.f32 %v1039_v53, %v153_v54  ;;  %v1209_v56 = vpop.f32.mrb[1].mxu0 }
 0x11f   :  { %v157_v58 = vmax.f32 %v154_v55, 0.0 }
 0x121   :  { %v1903_v59 = vmul.f32 %v1900_v57, %v157_v58 }
 0x123   :  { %v165_v60 = vmul.f32 %v1903_v59, %v1903_v59  ;;  %v159_v61 = vrot.slane %v1903_v59, 4 }
 0x125   :  { %v166_v62 = vrot.slane %v165_v60, 4  ;;  %v160_v63 = vadd.f32 %v159_v61, %v1903_v59  ;;  %v2000_v61 = vsub.s32 0, %v1896_v52  ;;  %v614_v52 = vld [vmem:[%s2090_s6 + $0x30] sm:$0xff] }
 0x127   :  { %v161_v2 = vrot.slane %v160_v63, 2  ;;  %v167_v3 = vadd.f32 %v166_v62, %v165_v60  ;;  %v479_v60 = vld [vmem:[#allocation2 + $0x1] sm:$0x1] }
 0x129   :  { %v162_v4 = vadd.f32 %v161_v2, %v160_v63  ;;  %v168_v5 = vrot.slane %v167_v3, 2  ;;  %v490_v2 = vld [vmem:[#allocation2 + $0x2] sm:$0x1] }
 0x12b   :  { %v163_v6 = vrot.slane %v162_v4, 1  ;;  %v169_v7 = vadd.f32 %v168_v5, %v167_v3 }
 0x12d   :  { %v164_v8 = vadd.f32 %v163_v6, %v162_v4  ;;  %v170_v9 = vrot.slane %v169_v7, 1 }
 0x12f   :  { %1243 = vmatmul.mubr.f32.vlgmr.msra.gmra.mrb[0].mxu1 %v164_v8  ;;  %v171_v11 = vadd.f32 %v170_v9, %v169_v7 }
 0x130   :  { %1281 = vmatpush3.msra.mxu1 %v328_v10  ;;  %1282 = vmatprep.mubr.msk.f32.mxu1 %vm1682_vm0, %v1683_v1 }
 0x131   :  { %1278 = vmatmul.mubr.f32.vlgmr.msra.gmra.mrb[2].mxu0 %v171_v11  ;;  %1285 = vmatprep.subr.mxu1 %v1683_v1  ;;  %v617_v11 = vld [vmem:[%s2090_s6 + $0x48] sm:$0xff] }
 0x132   :  { %1357 = vmatprep.mubr.msk.f32.mxu0 %vm1682_vm0, %v1683_v1  ;;  %1542 = vmatpush3.bf16.msra.mxu0 %v1541_v42 }
 0x133   :  { %1543 = vmatprep.subr.bf16.mxu0 %v1681_v0 }
 0x136   :  { %1545 = vmatpush3.bf16.msra.mxu0 %v1544_v45 }
 0x137   :  { %1546 = vmatprep.subr.bf16.mxu0 %v1681_v0 }
 0x13a   :  { %1548 = vmatpush3.bf16.msra.mxu0 %v1547_v48 }
 0x13b   :  { %1549 = vmatprep.subr.bf16.mxu0 %v1681_v0 }
 0x202   :  { %v254_v12 = vpop.f32.mrb[0].mxu1 }
 0x203   :  { %v1244_v13 = vpop.f32.mrb[1].mxu1  ;;  %1283 = vmatmul.mubr.msk.f32.vlgmr.msra.gmra.mrb[2].mxu1 %vm329_vm2, %v254_v12 }
 0x204   :  { %1286 = vmatpush3.msra.mxu1 %v328_v10  ;;  %v324_v14 = vpop.f32.mrb[2].mxu0  ;;  %1287 = vmatprep.mubr.msk.f32.mxu1 %vm1682_vm0, %v1683_v1  ;;  %v616_v10 = vld [vmem:[%s2090_s6 + $0x40] sm:$0xff]  ;;  %v618_v13 = vld [vmem:[%s2090_s6 + $0x50] sm:$0xff] }
 0x205   :  { %v1279_v15 = vpop.f32.mrb[3].mxu0  ;;  %1516 = vmatprep.subr.bf16.mxu1 %v1681_v0  ;;  %v1553_v12 = vpack.c.bf16 %v617_v11, %v616_v10 }
 0x207   :  { %1288 = vmatmul.mubr.msk.f32.vlgmr.msra.gmra.mrb[4].mxu1 %vm329_vm2, %v324_v14  ;;  %v619_v14 = vld [vmem:[%s2090_s6 + $0x58] sm:$0xff] }
 0x208   :  { %1322 = vmatprep.mubr.msk.f32.mxu1 %vm1682_vm0, %v1683_v1  ;;  %1518 = vmatpush3.bf16.msra.mxu1 %v1517_v18  ;;  %v1556_v15 = vpack.c.bf16 %v619_v14, %v618_v13  ;;  %v622_v18 = vld [vmem:[%s2090_s6 + $0x70] sm:$0xff] }
 0x209   :  { %1519 = vmatprep.subr.bf16.mxu1 %v1681_v0 }
 0x20c   :  { %1521 = vmatpush3.bf16.msra.mxu1 %v1520_v21  ;;  %v1562_v21 = vpack.c.bf16 %v623_v20, %v622_v18 }
 0x20d   :  { %1522 = vmatprep.subr.bf16.mxu1 %v1681_v0 }
 0x210   :  { %1524 = vmatpush3.bf16.msra.mxu1 %v1523_v24 }
 0x211   :  { %1525 = vmatprep.subr.bf16.mxu1 %v1681_v0 }
 0x214   :  { %1527 = vmatpush3.bf16.msra.mxu1 %v1526_v27 }
 0x215   :  { %1528 = vmatprep.subr.bf16.mxu1 %v1681_v0 }
 0x218   :  { %1530 = vmatpush3.bf16.msra.mxu1 %v1529_v30 }
 0x219   :  { %1531 = vmatprep.subr.bf16.mxu1 %v1681_v0 }
 0x21c   :  { %1533 = vmatpush3.bf16.msra.mxu1 %v1532_v33 }
 0x21d   :  { %1534 = vmatprep.subr.bf16.mxu1 %v1681_v0 }
 0x220   :  { %1536 = vmatpush3.bf16.msra.mxu1 %v1535_v37 }
 0x221   :  { %1537 = vmatprep.subr.bf16.mxu1 %v1681_v0 }
 0x224   :  { %1539 = vmatpush3.bf16.msra.mxu1 %v1538_v39  ;;  %v765_v39 = vld [vmem:[%s2091_s7 + $0x8] sm:$0xff] }
 0x225   :  { %1564 = vmatprep.subr.bf16.mxu1 %v1681_v0 }
 0x2d6   :  { %v399_v49 = vpop.f32.mrb[2].mxu1 }
 0x2d7   :  { %v1284_v50 = vpop.f32.mrb[3].mxu1  ;;  %v476_v51 = vmul.f32 %v399_v49, %v399_v49 }
 0x2da   :  { %v472_v53 = vpop.f32.mrb[4].mxu1 }
 0x2db   :  { %v477_v54 = vsub.f32 %v472_v53, %v476_v51  ;;  %v1289_v55 = vpop.f32.mrb[5].mxu1  ;;  %v939_v51 = vld [vmem:[#allocation4 + $0x10] sm:$0xff]  ;;  %v940_v53 = vld [vmem:[#allocation4 + $0x18] sm:$0xff] }
 0x2dc   :  { %v941_v55 = vld [vmem:[#allocation4 + $0x20] sm:$0xff] }
 0x2dd   :  { %v478_v56 = vmax.f32 %v477_v54, 0.0  ;;  %v1598_v54 = vpack.c.bf16 %v940_v53, %v939_v51 }
 0x2df   :  { %v480_v58 = vadd.f32 1e-05, %v478_v56  ;;  %v942_v56 = vld [vmem:[#allocation4 + $0x28] sm:$0xff] }
 0x2e1   :  { %1625 = vrsqrt.f32 %v480_v58  ;;  %v1601_v58 = vpack.c.bf16 %v942_v56, %v941_v55 }
 0x2eb   :  { %v1626_v62 = vpop.eup %1625 }
 0x2ec   :  { %v482_v63 = vmul.f32 %v1626_v62, %v479_v60  ;;  %v944_v60 = vld [vmem:[#allocation4 + $0x38] sm:$0xff] }
 0x2ee   :  { %v487_v3 = vrot.slane %v482_v63, %v2000_v61  ;;  %v491_v4 = vmul.f32 %v482_v63, %v399_v49  ;;  %v938_v49 = vld [vmem:[#allocation4 + $0x8] sm:$0xff]  ;;  %v945_v63 = vld [vmem:[#allocation4 + $0x40] sm:$0xff] }
 0x2f0   :  { %v492_v5 = vsub.f32 %v490_v2, %v491_v4  ;;  %v489_v6 = vmul.f32 %v487_v3, %v1903_v59  ;;  %v615_v59 = vld [vmem:[%s2090_s6 + $0x38] sm:$0xff]  ;;  %v947_v4 = vld [vmem:[#allocation4 + $0x50] sm:$0xff] }
 0x2f1   :  { %v1550_v9 = vpack.c.bf16 %v615_v59, %v614_v52  ;;  %v946_v2 = vld [vmem:[#allocation4 + $0x48] sm:$0xff]  ;;  %v951_v52 = vld [vmem:[#allocation4 + $0x70] sm:$0xff] }
 0x2f2   :  { %v497_v7 = vrot.slane %v492_v5, %v2000_v61  ;;  %v1607_v3 = vpack.c.bf16 %v946_v2, %v945_v63  ;;  %v948_v5 = vld [vmem:[#allocation4 + $0x58] sm:$0xff] }
 0x2f3   :  { %1551 = vmatpush3.bf16.msra.mxu0 %v1550_v9 }
 0x2f4   :  { %v499_v8 = vadd.f32 %v497_v7, %v489_v6  ;;  %1552 = vmatprep.subr.bf16.mxu0 %v1681_v0  ;;  %v1610_v6 = vpack.c.bf16 %v948_v5, %v947_v4  ;;  %v949_v7 = vld [vmem:[#allocation4 + $0x60] sm:$0xff] }
 0x2f6   :  { %1323 = vmatmul.mubr.f32.vlgmr.msra.gmra.mrb[6].mxu1 %v499_v8  ;;  %v950_v8 = vld [vmem:[#allocation4 + $0x68] sm:$0xff] }
 0x2f7   :  { %1566 = vmatpush3.bf16.msra.mxu1 %v1541_v42  ;;  %1392 = vmatprep.mubr.msk.f32.mxu1 %vm1682_vm0, %v1683_v1  ;;  %v1589_v42 = vpack.c.bf16 %v765_v39, %v764_v38  ;;  %v1613_v59 = vpack.c.bf16 %v950_v8, %v949_v7 }
 0x2f8   :  { %1567 = vmatprep.subr.bf16.mxu1 %v1681_v0  ;;  %1554 = vmatpush3.bf16.msra.mxu0 %v1553_v12 }
 0x2f9   :  { %1555 = vmatprep.subr.bf16.mxu0 %v1681_v0 }
 0x2fb   :  { %1569 = vmatpush3.bf16.msra.mxu1 %v1544_v45 }
 0x2fc   :  { %1570 = vmatprep.subr.bf16.mxu1 %v1681_v0  ;;  %1557 = vmatpush3.bf16.msra.mxu0 %v1556_v15 }
 0x2fd   :  { %1558 = vmatprep.subr.bf16.mxu0 %v1681_v0 }
 0x2ff   :  { %1572 = vmatpush3.bf16.msra.mxu1 %v1547_v48  ;;  %v937_v48 = vld [vmem:[#allocation4] sm:$0xff] }
 0x300   :  { %1573 = vmatprep.subr.bf16.mxu1 %v1681_v0  ;;  %1560 = vmatpush3.bf16.msra.mxu0 %v1559_v19  ;;  %v1595_v50 = vpack.c.bf16 %v938_v49, %v937_v48 }
 0x301   :  { %1561 = vmatprep.subr.bf16.mxu0 %v1681_v0 }
 0x303   :  { %1575 = vmatpush3.bf16.msra.mxu1 %v1550_v9  ;;  %v952_v9 = vld [vmem:[#allocation4 + $0x78] sm:$0xff] }
 0x304   :  { %1576 = vmatprep.subr.bf16.mxu1 %v1681_v0  ;;  %1563 = vmatpush3.bf16.msra.mxu0 %v1562_v21  ;;  %v1616_v10 = vpack.c.bf16 %v952_v9, %v951_v52 }
 0x305   :  { %1594 = vmatprep.subr.bf16.mxu0 %v1681_v0 }
 0x307   :  { %1578 = vmatpush3.bf16.msra.mxu1 %v1553_v12 }
 0x308   :  { %1579 = vmatprep.subr.bf16.mxu1 %v1681_v0 }
 0x30b   :  { %1581 = vmatpush3.bf16.msra.mxu1 %v1556_v15 }
 0x30c   :  { %1582 = vmatprep.subr.bf16.mxu1 %v1681_v0 }
 0x30f   :  { %1584 = vmatpush3.bf16.msra.mxu1 %v1559_v19  ;;  %v916_v19 = vld [vmem:[#allocation2 + $0x4] sm:$0x1] }
 0x310   :  { %1585 = vmatprep.subr.bf16.mxu1 %v1681_v0 }
 0x313   :  { %1587 = vmatpush3.bf16.msra.mxu1 %v1562_v21 }
 0x314   :  { %1588 = vmatprep.subr.bf16.mxu1 %v1681_v0 }
 0x3c9   :  { %v589_v23 = vpop.f32.mrb[6].mxu1 }
 0x3ca   :  { %v590_v24 = vadd.f32 %v1042_v22, %v589_v23  ;;  %v1324_v25 = vpop.f32.mrb[7].mxu1  ;;  %v927_v22 = vld [vmem:[#allocation2 + $0x5] sm:$0x1] }
 0x3cc   :  { %v593_v26 = vmax.f32 %v590_v24, 0.0 }
 0x3ce   :  { %v2051_v27 = vmul.f32 %v1900_v57, %v593_v26 }
 0x3d0   :  { %v595_v28 = vrot.slane %v2051_v27, 4  ;;  %v601_v29 = vmul.f32 %v2051_v27, %v2051_v27 }
 0x3d2   :  { %v596_v30 = vadd.f32 %v595_v28, %v2051_v27  ;;  %v602_v31 = vrot.slane %v601_v29, 4 }
 0x3d4   :  { %v597_v32 = vrot.slane %v596_v30, 2  ;;  %v603_v33 = vadd.f32 %v602_v31, %v601_v29  ;;  %v1045_v29 = vld [vmem:[#allocation2 + $0x6] ss:$0 sm:$0xff] }
 0x3d6   :  { %v598_v34 = vadd.f32 %v597_v32, %v596_v30  ;;  %v604_v35 = vrot.slane %v603_v33, 2 }
 0x3d8   :  { %v599_v36 = vrot.slane %v598_v34, 1  ;;  %v605_v37 = vadd.f32 %v604_v35, %v603_v33 }
 0x3da   :  { %v600_v40 = vadd.f32 %v599_v36, %v598_v34  ;;  %v606_v41 = vrot.slane %v605_v37, 1 }
 0x3dc   :  { %1358 = vmatmul.mubr.f32.vlgmr.msra.gmra.mrb[4].mxu0 %v600_v40  ;;  %v607_v43 = vadd.f32 %v606_v41, %v605_v37 }
 0x3dd   :  { %1441 = vmatprep.mubr.msk.f32.mxu0 %vm1682_vm0, %v1683_v1  ;;  %1596 = vmatpush3.bf16.msra.mxu0 %v1595_v50 }
 0x3de   :  { %1393 = vmatmul.mubr.f32.vlgmr.msra.gmra.mrb[8].mxu1 %v607_v43  ;;  %1597 = vmatprep.subr.bf16.mxu0 %v1681_v0 }
 0x3df   :  { %1590 = vmatpush3.bf16.msra.mxu1 %v1589_v42  ;;  %1399 = vmatprep.mubr.msk.f32.mxu1 %vm1682_vm0, %v1683_v1 }
 0x3e0   :  { %1591 = vmatprep.subr.bf16.mxu1 %v1681_v0 }
 0x3e1   :  { %1599 = vmatpush3.bf16.msra.mxu0 %v1598_v54 }
 0x3e2   :  { %1600 = vmatprep.subr.bf16.mxu0 %v1681_v0 }
 0x3e5   :  { %1602 = vmatpush3.bf16.msra.mxu0 %v1601_v58 }
 0x3e6   :  { %1603 = vmatprep.subr.bf16.mxu0 %v1681_v0 }
 0x4af   :  { %v690_v44 = vpop.f32.mrb[4].mxu0 }
 0x4b0   :  { %v1359_v45 = vpop.f32.mrb[5].mxu0  ;;  %1400 = vmatmul.mubr.msk.f32.vlgmr.msra.gmra.mrb[10].mxu1 %vm766_vm3, %v690_v44 }
 0x4b1   :  { %1593 = vmatpush3.bf16.msra.mxu1 %v1589_v42  ;;  %v760_v46 = vpop.f32.mrb[8].mxu1  ;;  %1406 = vmatprep.mubr.msk.f32.mxu1 %vm1682_vm0, %v1683_v1  ;;  %v943_v1 = vld [vmem:[#allocation4 + $0x30] sm:$0xff] }
 0x4b2   :  { %v1394_v47 = vpop.f32.mrb[9].mxu1  ;;  %v1604_v62 = vpack.c.bf16 %v944_v60, %v943_v1 }
 0x4b4   :  { %1407 = vmatmul.mubr.msk.f32.vlgmr.msra.gmra.mrb[12].mxu1 %vm766_vm3, %v760_v46  ;;  %1605 = vmatpush3.bf16.msra.mxu0 %v1604_v62 }
 0x4b5   :  { %1606 = vmatprep.subr.bf16.mxu0 %v1681_v0 }
 0x4b8   :  { %1608 = vmatpush3.bf16.msra.mxu0 %v1607_v3 }
 0x4b9   :  { %1609 = vmatprep.subr.bf16.mxu0 %v1681_v0 }
 0x4bc   :  { %1611 = vmatpush3.bf16.msra.mxu0 %v1610_v6 }
 0x4bd   :  { %1612 = vmatprep.subr.bf16.mxu0 %v1681_v0 }
 0x4c0   :  { %1614 = vmatpush3.bf16.msra.mxu0 %v1613_v59 }
 0x4c1   :  { %1615 = vmatprep.subr.bf16.mxu0 %v1681_v0 }
 0x4c4   :  { %1617 = vmatpush3.bf16.msra.mxu0 %v1616_v10 }
 0x583   :  { %v836_v11 = vpop.f32.mrb[10].mxu1 }
 0x584   :  { %v1401_v12 = vpop.f32.mrb[11].mxu1  ;;  %v913_v13 = vmul.f32 %v836_v11, %v836_v11 }
 0x587   :  { %v909_v14 = vpop.f32.mrb[12].mxu1 }
 0x588   :  { %v914_v15 = vsub.f32 %v909_v14, %v913_v13  ;;  %v1408_v16 = vpop.f32.mrb[13].mxu1 }
 0x58a   :  { %v915_v17 = vmax.f32 %v914_v15, 0.0 }
 0x58c   :  { %v917_v18 = vadd.f32 1e-05, %v915_v17 }
 0x58e   :  { %1627 = vrsqrt.f32 %v917_v18 }
 0x598   :  { %v1628_v20 = vpop.eup %1627 }
 0x599   :  { %v919_v21 = vmul.f32 %v1628_v20, %v916_v19 }
 0x59b   :  { %v924_v23 = vrot.slane %v919_v21, %v2000_v61  ;;  %v928_v24 = vmul.f32 %v919_v21, %v836_v11 }
 0x59d   :  { %v929_v25 = vsub.f32 %v927_v22, %v928_v24  ;;  %v926_v0 = vmul.f32 %v924_v23, %v2051_v27 }
 0x59f   :  { %v934_v26 = vrot.slane %v929_v25, %v2000_v61 }
 0x5a1   :  { %v936_v28 = vadd.f32 %v934_v26, %v926_v0 }
 0x5a3   :  { %1442 = vmatmul.mubr.f32.vlgmr.msra.gmra.mrb[6].mxu0 %v936_v28 }
 0x676   :  { %v1026_v30 = vpop.f32.mrb[6].mxu0 }
 0x677   :  { %v1027_v31 = vadd.f32 %v1045_v29, %v1026_v30  ;;  %v1443_v32 = vpop.f32.mrb[7].mxu0 }
 0x679   :  { %v1030_v33 = vmul.f32 %v1900_v57, %v1027_v31 }
 0x67b   :  { %1031 = vst [vmem:[%s2093_s9] sm:$0xff] %v1030_v33 }
 0x67c   :  { %1036 = vsyncpa [#allocation3], 1 }
 0x67d   :  { %1037 = vsyncpa [#allocation5], 1 }

</bundles_post_ra>
